<compile_context>
chip_gen: v6e
topology: v6e:2x2x1
jax: 0.10.0
libtpu: 0.0.40
codegen_flags: <defaults>
</compile_context>

<pallas_src>
import jax
import jax.numpy as jnp
from jax import lax
from jax.experimental import pallas as pl
from jax.experimental.pallas import tpu as pltpu


def _channel_attention_kernel(beta_ref, x_ref, o_ref, att_ref, att_c_ref):
    """Grid = (batch, phase, hw_tile). Phase 0: gram + softmax; phase 1: apply."""
    phase = pl.program_id(1)
    k = pl.program_id(2)
    num_k = pl.num_programs(2)
    compute_dtype = att_c_ref.dtype

    @pl.when(phase == 0)
    def _gram():
        a = x_ref[0].astype(compute_dtype)                      # (C, tHW)
        # Contract the last dim of both operands (trans-B form): no transposed
        # copy of `a`; MXU matmul with f32 accumulation.
        gram = lax.dot_general(
            a, a,
            dimension_numbers=(((1,), (1,)), ((), ())),
            preferred_element_type=jnp.float32)

        @pl.when(k == 0)
        def _first():                                           # assign, no zero-fill
            att_ref[...] = gram

        @pl.when(k > 0)
        def _accumulate():
            att_ref[...] += gram

        @pl.when(k == num_k - 1)
        def _softmax():
            att = att_ref[...]                                  # (C, C) f32
            # softmax(rowmax(att) - att) == softmax(-att); stable form with a
            # single row-min reduction.
            p = jnp.exp(jnp.min(att, axis=-1, keepdims=True) - att)
            inv = pl.reciprocal(jnp.sum(p, axis=-1, keepdims=True), approx=False)
            # Cast to the matmul dtype once (not per phase-1 tile step).
            att_c_ref[...] = (p * inv).astype(compute_dtype)

    @pl.when(phase == 1)
    def _apply():
        a = x_ref[0]                                            # (C, tHW)
        feat_e = jnp.dot(att_c_ref[...], a.astype(compute_dtype),
                         preferred_element_type=jnp.float32)    # (C, tHW) f32
        o_ref[0] = (beta_ref[0] * feat_e
                    + a.astype(jnp.float32)).astype(o_ref.dtype)


def _round_up(v, m):
    return (v + m - 1) // m * m


def _vmem_capacity_bytes():
    # Generation-aware: v7x has 64 MiB VMEM per TensorCore, v5e/v6e 128 MiB.
    # Fall back to the most conservative figure if the query is unavailable
    # (e.g. interpret mode off-TPU).
    try:
        cap = int(pltpu.get_tpu_info().vmem_capacity_bytes)
        return cap if cap > 0 else (64 << 20)
    except Exception:
        return 64 << 20


def channel_attention(x, beta, *, compute_dtype=jnp.bfloat16,
                      vmem_budget_frac=0.7):
    """DANet channel attention. x: (B, C, H, W), beta: scalar -> (B, C, H, W)."""
    B, C, H, W = x.shape
    HW = H * W
    itemsize = jnp.dtype(x.dtype).itemsize
    c_itemsize = jnp.dtype(compute_dtype).itemsize

    # --- HW tile sizing ------------------------------------------------------
    # Per-step VMEM footprint: 2 double-buffered input blocks + 2 output blocks
    # of (C, t_hw) x-dtype elements, plus the two (C, C) attention scratches.
    # Pick the largest lane-dense (multiple-of-128) t_hw that fits the budget;
    # if a whole padded batch row fits, num_k == 1 and x stays VMEM-resident
    # across both phases (single HBM read of x).
    vmem_cap = _vmem_capacity_bytes()
    budget = int(vmem_cap * vmem_budget_frac)
    scratch_bytes = C * C * (4 + c_itemsize)
    bytes_per_hw_col = 4 * C * itemsize                # 2x in + 2x out buffers
    avail = max(budget - scratch_bytes, 128 * bytes_per_hw_col)
    max_t = max(128, (avail // bytes_per_hw_col) // 128 * 128)

    hw_128 = _round_up(HW, 128)
    num_k = -(-hw_128 // max_t)                        # cdiv
    t_hw = _round_up(-(-hw_128 // num_k), 128)         # balanced, lane-dense tiles
    HWp = t_hw * num_k

    x_flat = x.reshape(B, C, HW)
    if HWp != HW:
        # Zero-padded columns contribute nothing to the gram matrix and the
        # padded output columns are sliced off below.
        x_flat = jnp.pad(x_flat, ((0, 0), (0, 0), (0, HWp - HW)))

    beta_arr = jnp.asarray(beta, jnp.float32).reshape(1)

    footprint = bytes_per_hw_col * t_hw + scratch_bytes
    vmem_limit = int(min(vmem_cap * 0.9, max(footprint + (16 << 20), 32 << 20)))

    cost = pl.CostEstimate(
        flops=int(4 * B * C * C * HWp),                # gram + apply matmuls
        transcendentals=int(B * C * C),                # softmax exp
        # x read once (resident, num_k == 1) or twice (tiled), output once.
        bytes_accessed=int(((1 if num_k == 1 else 2) + 1) * B * C * HWp * itemsize),
    )

    out_flat = pl.pallas_call(
        _channel_attention_kernel,
        out_shape=jax.ShapeDtypeStruct((B, C, HWp), x.dtype),
        grid_spec=pltpu.PrefetchScalarGridSpec(
            num_scalar_prefetch=1,                     # beta -> SMEM scalar
            grid=(B, 2, num_k),
            in_specs=[
                # Same block index for both phases of a batch -> when num_k==1
                # the x block is not re-fetched for phase 1.
                pl.BlockSpec((1, C, t_hw), lambda b, p, k, beta: (b, 0, k)),
            ],
            # Phase 0 pins the output index at block 0 (nothing written yet ->
            # no writeback); phase 1 writes block k per step.
            out_specs=pl.BlockSpec((1, C, t_hw),
                                   lambda b, p, k, beta: (b, 0, p * k)),
            scratch_shapes=[pltpu.VMEM((C, C), jnp.float32),     # gram/softmax acc
                            pltpu.VMEM((C, C), compute_dtype)],  # softmax, cast once
        ),
        compiler_params=pltpu.CompilerParams(
            dimension_semantics=("parallel", "arbitrary", "arbitrary"),
            vmem_limit_bytes=vmem_limit),
        cost_estimate=cost,
    )(beta_arr, x_flat)

    if HWp != HW:
        out_flat = out_flat[..., :HW]
    return out_flat.reshape(B, C, H, W)


# ------------------------------ references ----------------------------------

def channel_attention_ref(x, beta):
    """Pure-JAX f32 reference matching the PyTorch forward."""
    B, C, H, W = x.shape
    a = x.astype(jnp.float32).reshape(B, C, H * W)
    att = jnp.einsum("bcn,bdn->bcd", a, a, precision=lax.Precision.HIGHEST)
    att_new = jnp.max(att, axis=-1, keepdims=True) - att
    att_sm = jax.nn.softmax(att_new, axis=-1)
    feat_e = jnp.einsum("bcd,bdn->bcn", att_sm, a,
                        precision=lax.Precision.HIGHEST).reshape(B, C, H, W)
    return beta * feat_e + x.astype(jnp.float32)


def channel_attention_ref_quantized(x, beta, compute_dtype=jnp.bfloat16):
    """Reference with the same quantization points as the kernel's bf16 path."""
    B, C, H, W = x.shape
    a = x.reshape(B, C, H * W).astype(compute_dtype).astype(jnp.float32)
    att = jnp.einsum("bcn,bdn->bcd", a, a, precision=lax.Precision.HIGHEST)
    p = jnp.exp(jnp.min(att, axis=-1, keepdims=True) - att)
    att_sm = (p / jnp.sum(p, axis=-1, keepdims=True)
              ).astype(compute_dtype).astype(jnp.float32)
    feat_e = jnp.einsum("bcd,bdn->bcn", att_sm, a,
                        precision=lax.Precision.HIGHEST).reshape(B, C, H, W)
    return beta * feat_e + x.astype(jnp.float32)


if __name__ == "__main__":
    key0, key1 = jax.random.split(jax.random.PRNGKey(0))

    # nn.Parameter(torch.zeros(1)) initializes beta to 0 in the module; use a
    # deterministic nonzero value here so the full attention path is exercised.
    beta = jnp.float32(0.5)

    # Case 1: f32 compute path vs the exact f32 reference.
    B, C, H, W = 2, 4, 16, 16
    x = jax.random.normal(key0, (B, C, H, W), dtype=jnp.float32)
    ref1 = channel_attention_ref(x, beta)
    out1 = jax.block_until_ready(
        channel_attention(x, beta, compute_dtype=jnp.float32))
    assert out1.shape == (B, C, H, W)
    assert jnp.allclose(out1, ref1, atol=5e-3, rtol=5e-3), \
        "mismatch vs reference (f32 path)"

    # Case 2: HW not a multiple of 128 -> exercises the lane-padding path.
    x2 = jax.random.normal(key1, (1, 4, 5, 7), dtype=jnp.float32)
    ref2 = channel_attention_ref(x2, beta)
    out2 = jax.block_until_ready(
        channel_attention(x2, beta, compute_dtype=jnp.float32))
    assert out2.shape == x2.shape
    assert jnp.allclose(out2, ref2, atol=5e-3, rtol=5e-3), \
        "mismatch vs reference (padding path)"

    # Case 3: default bf16 compute path vs a reference with matching
    # quantization points (validates the kernel mechanics under bf16; the
    # bf16-vs-f32 accuracy gap is a dtype property, not a kernel bug).
    ref3 = channel_attention_ref_quantized(x, beta)
    out3 = jax.block_until_ready(channel_attention(x, beta))
    assert out3.shape == (B, C, H, W)
    assert jnp.allclose(out3, ref3, atol=5e-3, rtol=5e-3), \
        "mismatch vs reference (bf16 path)"

    print("KERNEL_OK")
</pallas_src>

<mosaic_0001>
module attributes {stable_mosaic.version = 11 : i64} {
  func.func @_channel_attention_kernel(%arg0: i32, %arg1: i32, %arg2: i32, %arg3: memref<1xf32, #tpu.memory_space<smem>>, %arg4: memref<1x4x256xf32, #tpu.memory_space<vmem>>, %arg5: memref<1x4x256xf32, #tpu.memory_space<vmem>>, %arg6: memref<4x4xf32, #tpu.memory_space<vmem>>, %arg7: memref<4x4xf32, #tpu.memory_space<vmem>>) attributes {dimension_semantics = [#tpu.dimension_semantics<parallel>, #tpu.dimension_semantics<arbitrary>, #tpu.dimension_semantics<arbitrary>], iteration_bounds = array<i64: 2, 2, 1>, scalar_prefetch = 1 : i64, scratch_operands = 2 : i64, tpu.core_type = #tpu.core_type<tc>, window_params = [{transform_indices = @transform_0, window_bounds = array<i64: 1, 4, 256>}, {transform_indices = @transform_1, window_bounds = array<i64: 1, 4, 256>}]} {
    %c0_i32 = arith.constant 0 : i32
    %0 = arith.cmpi eq, %arg1, %c0_i32 : i32
    %1 = arith.extui %0 : i1 to i32
    %c0_i32_0 = arith.constant 0 : i32
    %2 = arith.cmpi ne, %1, %c0_i32_0 : i32
    scf.if %2 {
      %c0 = arith.constant 0 : index
      %c0_2 = arith.constant 0 : index
      %c0_3 = arith.constant 0 : index
      %6 = vector.load %arg4[%c0, %c0_2, %c0_3] : memref<1x4x256xf32, #tpu.memory_space<vmem>>, vector<1x4x256xf32>
      %7 = vector.shape_cast %6 : vector<1x4x256xf32> to vector<4x256xf32>
      %cst = arith.constant dense<0.000000e+00> : vector<4x4xf32>
      %8 = tpu.matmul %7, %7, %cst {dimension_numbers = #tpu.dot_dimension_numbers<[1], [1], [0], [0], [0, 0, 1, 0], [], []>} : vector<4x256xf32>, vector<4x256xf32>, vector<4x4xf32> -> vector<4x4xf32>
      %c0_i32_4 = arith.constant 0 : i32
      %9 = arith.cmpi eq, %arg2, %c0_i32_4 : i32
      %10 = arith.extui %9 : i1 to i32
      %c0_i32_5 = arith.constant 0 : i32
      %11 = arith.cmpi ne, %10, %c0_i32_5 : i32
      scf.if %11 {
        %c0_10 = arith.constant 0 : index
        %c0_11 = arith.constant 0 : index
        %18 = vector.load %arg6[%c0_10, %c0_11] : memref<4x4xf32, #tpu.memory_space<vmem>>, vector<4x4xf32>
        tpu.vector_store %arg6[%c0_10, %c0_11], %8 {strides = array<i32>} : memref<4x4xf32, #tpu.memory_space<vmem>>, vector<4x4xf32>,
      } else {
      }
      %c0_i32_6 = arith.constant 0 : i32
      %12 = arith.cmpi sgt, %arg2, %c0_i32_6 : i32
      %13 = arith.extui %12 : i1 to i32
      %c0_i32_7 = arith.constant 0 : i32
      %14 = arith.cmpi ne, %13, %c0_i32_7 : i32
      scf.if %14 {
        %c0_10 = arith.constant 0 : index
        %c0_11 = arith.constant 0 : index
        %18 = vector.load %arg6[%c0_10, %c0_11] : memref<4x4xf32, #tpu.memory_space<vmem>>, vector<4x4xf32>
        %19 = arith.addf %18, %8 : vector<4x4xf32>
        %c0_12 = arith.constant 0 : index
        %c0_13 = arith.constant 0 : index
        %20 = vector.load %arg6[%c0_12, %c0_13] : memref<4x4xf32, #tpu.memory_space<vmem>>, vector<4x4xf32>
        tpu.vector_store %arg6[%c0_12, %c0_13], %19 {strides = array<i32>} : memref<4x4xf32, #tpu.memory_space<vmem>>, vector<4x4xf32>,
      } else {
      }
      %c0_i32_8 = arith.constant 0 : i32
      %15 = arith.cmpi eq, %arg2, %c0_i32_8 : i32
      %16 = arith.extui %15 : i1 to i32
      %c0_i32_9 = arith.constant 0 : i32
      %17 = arith.cmpi ne, %16, %c0_i32_9 : i32
      scf.if %17 {
        %c0_10 = arith.constant 0 : index
        %c0_11 = arith.constant 0 : index
        %18 = vector.load %arg6[%c0_10, %c0_11] : memref<4x4xf32, #tpu.memory_space<vmem>>, vector<4x4xf32>
        %cst_12 = arith.constant dense<0x7F800000> : vector<4xf32>
        %19 = vector.multi_reduction <minimumf>, %18, %cst_12 [1] : vector<4x4xf32> to vector<4xf32>
        %20 = vector.shape_cast %19 : vector<4xf32> to vector<4x1xf32>
        %21 = vector.broadcast %20 : vector<4x1xf32> to vector<4x4xf32>
        %22 = arith.subf %21, %18 : vector<4x4xf32>
        %23 = math.exp %22 : vector<4x4xf32>
        %cst_13 = arith.constant dense<0.000000e+00> : vector<4xf32>
        %24 = vector.multi_reduction <add>, %23, %cst_13 [1] : vector<4x4xf32> to vector<4xf32>
        %25 = vector.shape_cast %24 : vector<4xf32> to vector<4x1xf32>
        %26 = tpu.reciprocal %25 : vector<4x1xf32> -> vector<4x1xf32>
        %27 = vector.broadcast %26 : vector<4x1xf32> to vector<4x4xf32>
        %28 = arith.mulf %23, %27 : vector<4x4xf32>
        %c0_14 = arith.constant 0 : index
        %c0_15 = arith.constant 0 : index
        %29 = vector.load %arg7[%c0_14, %c0_15] : memref<4x4xf32, #tpu.memory_space<vmem>>, vector<4x4xf32>
        tpu.vector_store %arg7[%c0_14, %c0_15], %28 {strides = array<i32>} : memref<4x4xf32, #tpu.memory_space<vmem>>, vector<4x4xf32>,
      } else {
      }
    } else {
    }
    %c1_i32 = arith.constant 1 : i32
    %3 = arith.cmpi eq, %arg1, %c1_i32 : i32
    %4 = arith.extui %3 : i1 to i32
    %c0_i32_1 = arith.constant 0 : i32
    %5 = arith.cmpi ne, %4, %c0_i32_1 : i32
    scf.if %5 {
      %c0 = arith.constant 0 : index
      %c0_2 = arith.constant 0 : index
      %c0_3 = arith.constant 0 : index
      %6 = vector.load %arg4[%c0, %c0_2, %c0_3] : memref<1x4x256xf32, #tpu.memory_space<vmem>>, vector<1x4x256xf32>
      %7 = vector.shape_cast %6 : vector<1x4x256xf32> to vector<4x256xf32>
      %c0_4 = arith.constant 0 : index
      %c0_5 = arith.constant 0 : index
      %8 = vector.load %arg7[%c0_4, %c0_5] : memref<4x4xf32, #tpu.memory_space<vmem>>, vector<4x4xf32>
      %cst = arith.constant dense<0.000000e+00> : vector<4x256xf32>
      %9 = tpu.matmul %8, %7, %cst {dimension_numbers = #tpu.dot_dimension_numbers<[1], [0], [0], [1], [0, 0, 1, 1], [], []>} : vector<4x4xf32>, vector<4x256xf32>, vector<4x256xf32> -> vector<4x256xf32>
      %c0_6 = arith.constant 0 : index
      %10 = memref.load %arg3[%c0_6] : memref<1xf32, #tpu.memory_space<smem>>
      %11 = vector.broadcast %10 : f32 to vector<4x256xf32>
      %12 = arith.mulf %11, %9 : vector<4x256xf32>
      %13 = arith.addf %12, %7 : vector<4x256xf32>
      %c0_7 = arith.constant 0 : index
      %c0_8 = arith.constant 0 : index
      %c0_9 = arith.constant 0 : index
      %14 = vector.load %arg5[%c0_7, %c0_8, %c0_9] : memref<1x4x256xf32, #tpu.memory_space<vmem>>, vector<1x4x256xf32>
      %15 = vector.shape_cast %14 : vector<1x4x256xf32> to vector<4x256xf32>
      %16 = vector.shape_cast %13 : vector<4x256xf32> to vector<1x4x256xf32>
      tpu.vector_store %arg5[%c0_7, %c0_8, %c0_9], %16 {strides = array<i32>} : memref<1x4x256xf32, #tpu.memory_space<vmem>>, vector<1x4x256xf32>,
    } else {
    }
    return
  }
  func.func @transform_0(%arg0: i32, %arg1: i32, %arg2: i32, %arg3: memref<1xf32, #tpu.memory_space<smem>>) -> (i32, i32, i32) {
    %c0_i32 = arith.constant 0 : i32
    %c0_i32_0 = arith.constant 0 : i32
    return %arg0, %c0_i32, %arg2 : i32, i32, i32
  }
  func.func @transform_1(%arg0: i32, %arg1: i32, %arg2: i32, %arg3: memref<1xf32, #tpu.memory_space<smem>>) -> (i32, i32, i32) {
    %0 = arith.muli %arg1, %arg2 : i32
    %c0_i32 = arith.constant 0 : i32
    %c0_i32_0 = arith.constant 0 : i32
    return %arg0, %c0_i32, %0 : i32, i32, i32
  }
}

</mosaic_0001>

<bundles_post_ra>
// kernel: tpu_custom_call.1
= control target key start
LH: loop header
LB: loop body
LE: loop exit
PB: predicated region body
PF: predicated region fallthrough
CT: control target
= control target key end

     0   :  { %s902_s0 = inlined_call_operand.<no memory space> [shape: f32[1], index: 0, kind: input, shape index: {}]   ;;  %s903_s1 = inlined_call_operand.hbm [shape: f32[2,4,256], index: 1, kind: input, shape index: {}]   ;;  %s904_s2 = inlined_call_operand.hbm [shape: f32[2,4,256], index: 2, kind: output, shape index: {}]  }
   0x1   :  { %7 = sst [smem:[#allocation5]] %s902_s0 }
   0x2   :  { %8 = vsyncpa [#allocation7], 0 }
   0x3   :  { %10 = vsyncpa [#allocation7 + $0x1], 0 }
   0x4   :  { %11 = vsyncpa [#allocation8], 0 }
   0x5   :  { %13 = vsyncpa [#allocation8 + $0x1], 0  ;;  %s736_s11 = smov 0   ;;  %s738_s12 = smov 0  }
   0x6   :  { %s740_s13 = smov 0   ;;  %s742_s14 = smov 0  }
   0x7   :  { %s744_s15 = smov 0   ;;  %s746_s16 = smov 0  }
   0x8   :  { %s748_s17 = smov 0   ;;  %s750_s18 = smov 0  }
   0x9 LB: > { %s482_s0 = sadd.s32 4294967295, %s713_s18   ;;  %s483_s19 = sadd.s32 4294967294, %s713_s18   ;;  %s713_s18 = sphi %s750_s18, %s19_s18   ;;  %s709_s17 = sphi %s748_s17, %s917_s17   ;;  %s705_s16 = sphi %s746_s16, %s916_s16   ;;  %s701_s15 = sphi %s744_s15, %s915_s15   ;;  %s697_s14 = sphi %s742_s14, %s914_s14   ;;  %s693_s13 = sphi %s740_s13, %s913_s13   ;;  %s689_s12 = sphi %s738_s12, %s912_s12   ;;  %s685_s11 = sphi %s736_s11, %s911_s11  }
   0xa   : > { %s34_s20 = sadd.s32 1, %s705_s16  ;;  %s38_s21 = sadd.s32 1, %s709_s17 }
   0xb   : > { %p36_p0 = scmp.ge.s32.totalorder %s34_s20, 2  ;;  %s47_s22 = sadd.s32 1, %s693_s13 }
   0xc   : > { %p54_p1 = scmp.ne.s32.totalorder %s693_s13, %s689_s12  ;;  %p55_p2 = scmp.eq.s32.totalorder %s713_s18, 0 }
   0xd   : > { %s919_s20 = smov (%p36_p0, %s34_s20), 0  ;;  %s921_s21 = smov (!%p36_p0, %s38_s21), %s709_s17 }
   0xe   : > { %p787_p3 = por %p55_p2, %p54_p1  ;;  %p60_p4 = scmp.ne.s32.totalorder %s689_s12, %s685_s11 }
   0xf   : > { %p40_p5 = scmp.ge.s32.totalorder %s921_s21, 2  ;;  %p61_p6 = scmp.eq.s32.totalorder %s482_s0, 0 }
  0x10   : > { %p88_p7 = scmp.eq.s32.totalorder %s482_s0, 3  ;;  %p94_p8 = scmp.eq.s32.totalorder %s483_s19, 3 }
  0x11   : > { %s923_s21 = smov (%p40_p5, %s921_s21), 0  ;;  %p795_p9 = por %p61_p6, %p60_p4 }
  0x12   : > { %p799_p10 = por %p88_p7, %p54_p1  ;;  %s42_s26 = ssub.s32 %s709_s17, %s923_s21 }
  0x13   : > { %p805_p11 = por %p94_p8, %p60_p4  ;;  %p45_p12 = scmp.eq.s32.totalorder %s42_s26, 0 }
  0x14   : > { %p516_p13 = scmp.lt.s32.totalorder %s713_s18, 4  ;;  %s114_s28 = sand.u32 1, %s693_s13  }
  0x15   : > { %s908_s27 = scalar_select %p805_p11, 1, 0 }
  0x16   : > { %s812_s29 = scalar_select %p45_p12, %s693_s13, %s47_s22  }
  0x17   : > { %s486_s30 = sshll.u32 %s114_s28, 3  ;;  %s502_s3 = sshll.u32 %s709_s17, 7 }
  0x18   : > { %s126_s6 = scalar_lea.hbm %s903_s1, %s502_s3  ;;  %s118_s7 = scalar_lea.vmem [#allocation6], %s486_s30 }
  0x19   : > { %s128_s8 = sshll.u32 %s118_s7, 4  ;;  %p820_p0 = pnand %p516_p13, %p787_p3  ;;  %s129_s8 = int_to_ptr.vmem [resolvable:$true] %s128_s8 }
  0x1a   : > { %p489_p1 = scmp.ge.s32.totalorder %s713_s18, 1  ;;  %p133_p2 = scmp.lt.s32.totalorder %s713_s18, 5 }
  0x1b   : > { %s115_s10 = scalar_lea.sflag [#allocation7], %s114_s28  ;;  %p591_p4 = pneg %p820_p0 }
  0x1c   : > { %s602_s0 = scalar_lea.vmem %s129_s8, 128  ;;  %s715_s19 = smov [#allocation6]  }
  0x1d   : > { %p603_p5 = scmp.ne.s32.totalorder %s129_s8, %s602_s0  ;;  %s607_s22 = sshll.u32 %s715_s19, 4  ;;  %s608_s22 = int_to_ptr.vmem [resolvable:$false] %s607_s22 }
  0x1e   : > { %s609_s26 = scalar_lea.vmem %s608_s22, 256  ;;  %p610_p8 = scmp.lt.s32.totalorder %s129_s8, %s608_s22 }
  0x1f   : > { %p605_p6 = pnand %p603_p5, %p591_p4  ;;  %p611_p12 = scmp.lt.s32.totalorder %s609_s26, %s602_s0 }
  0x21   : > { %p606_p7 = pneg %p605_p6  ;;  %p612_p3 = por %p611_p12, %p610_p8 }
  0x23   : > { %p613_p13 = pnand %p612_p3, %p606_p7 }
  0x25   : > { %616 = shalt.err (!%p613_p13)
}
  0x26   : > { %511 = dma.hbm_to_vmem [thread:$0]  (!%p820_p0), %s126_s6, 128, %s129_s8, %s115_s10  }
  0x27   : > { %p134_p11 = pnand %p489_p1, %p133_p2 }
  0x28   : > { %s835_s23 = sand.u32 (!%p134_p11), 1, %s689_s12  }
  0x29   : > { %137 = sbr.rel (%p134_p11) target bundleno = 812 (0x32c), region = 24  ;;  %s490_s28 = sshll.u32 (!%p134_p11), %s835_s23, 3 }
  0x2a   : > { %s140_s30 = scalar_lea.sflag (!%p134_p11), [#allocation7], %s835_s23  ;;  %s839_s3 = scalar_lea.vmem (!%p134_p11), [#allocation6], %s490_s28 }
  0x2e   : > { %676 = dma.done.wait (%p795_p9), %s140_s30, 128  }
  0x2f   : > { %678 = vsyncadd (%p795_p9), %s140_s30, 4294967168  ;;  %s845_s4 = scalar_lea.vmem [#allocation9], %s490_s28  ;;  %p492_p0 = scmp.ne.s32.totalorder %s697_s14, 0 }
  0x31   : > { %168 = sbr.rel (%p492_p0) target bundleno = 575 (0x23f), region = 32 }
  0x36   : > { %v169_v0 = vld [vmem:[%s839_s3] sm:$0xff]  ;;  %vm247_vm0 = vcmask 27648  }
  0x37   : > { %v171_v1 = vcombine.high %v169_v0, %v169_v0 }
  0x39   : > { %203 = vmatprep.subr.mxu0 %v171_v1  ;;  %237 = vmatprep.mubr.f32.mxu0 %v171_v1 }
  0x3a   : > { %204 = vmatpush1.xpose.msra.mxu0 %v169_v0 }
  0x3d   : > { %238 = vmatmul.mubr.f32.vlgmr.msra.gmra.mxu0 %v169_v0 }
  0xfd   : > { %v239_v2 = vpop.f32.mrf.mxu0 }
  0xfe   : > { %248 = vst.msk [vmem:[#allocation2] sm:$0xf] %vm247_vm0, %v239_v2 }
  0xff   : > { %v241_v3 = vpop.f32.mrf.mxu0 }
 0x105   : > { %v260_v4 = vld [vmem:[#allocation2] sm:$0xf] }
 0x106   : > { %v262_v5 = vsel %vm247_vm0, %v260_v4, inf }
 0x107   : > { %263 = vmin.xlane.f32.xlu0 %v262_v5 }
 0x190   : > { %v264_v6 = vpop.xlane.xlu0 %263 }
 0x191   : > { %v265_v7 = vsub.f32 %v264_v6, %v260_v4 }
 0x193   : > { %v266_v8 = vmul.f32 1.442695, %v265_v7 }
 0x195   : > { %584 = vpow2.f32 %v266_v8 }
 0x1a2   : > { %v585_v9 = vpop.eup %584 }
 0x1a3   : > { %v268_v10 = vsel %vm247_vm0, %v585_v9, 0.0 }
 0x1a4   : > { %269 = vadd.xlane.f32.xlu0 %v268_v10 }
 0x22d   : > { %v270_v11 = vpop.xlane.xlu0 %269 }
 0x22e   : > { %586 = vrcp.f32 %v270_v11 }
 0x23b   : > { %v587_v12 = vpop.eup %586 }
 0x23c   : > { %v272_v13 = vmul.f32 %v587_v12, %v585_v9 }
 0x23e   : > { %273 = vst.msk [vmem:[#allocation3] sm:$0xf] %vm247_vm0, %v272_v13 }
 0x23f PF: > { %p493_p9 = scmp.ne.s32.totalorder %s697_s14, 1 }
 0x240   : > { %s362_s24 = sld [smem:[#allocation5]] (!%p493_p9) }
 0x241   : > { %277 = sbr.rel (%p493_p9) target bundleno = 789 (0x315), region = 48 }
 0x246   : > { %v278_v14 = vld [vmem:[%s839_s3] sm:$0xff]  ;;  %vm286_vm1 = vcmask 1043456   ;;  %v716_v16 = vmov 0.0   ;;  %v279_v17 = vld [vmem:[#allocation3] sm:$0xf]  ;;  %vm282_vm2 = vcmask 31744   ;;  %v363_v18 = vstv %s362_s24 }
 0x247   : > { %v281_v15 = vcombine.high %v278_v14, %v278_v14  ;;  %355 = vmatprep.mubr.f32.mxu0 %v716_v16 }
 0x249   : > { %494 = vmatprep.subr.msk.mxu0 %vm286_vm1, %v281_v15 }
 0x24a   : > { %495 = vmatpush1.msk.msra.mxu0 %vm286_vm1, %v278_v14 }
 0x24b   : > { %496 = vmatmul.mubr.msk.f32.vlgmr.msra.gmra.mxu0 %vm282_vm2, %v279_v17 }
 0x30b   : > { %v357_v19 = vpop.f32.mrf.mxu0 }
 0x30c   : > { %v364_v20 = vmul.f32 %v363_v18, %v357_v19 }
 0x30d   : > { %v359_v21 = vpop.f32.mrf.mxu0 }
 0x30e   : > { %v365_v22 = vmul.f32 %v363_v18, %v359_v21  ;;  %v367_v23 = vadd.f32 %v364_v20, %v278_v14 }
 0x310   : > { %v368_v24 = vadd.f32 %v365_v22, %v281_v15 }
 0x312   : > { %v371_v25 = vcombine.low %v367_v23, %v368_v24 }
 0x314   : > { %373 = vst [vmem:[%s845_s4] sm:$0xff] %v371_v25 }
 0x315 PF: > { %s503_s14 = sshll.u32 %s701_s15, 7  ;;  %s392_s8 = sshll.u32 %s845_s4, 4  ;;  %s393_s8 = int_to_ptr.vmem [resolvable:$true] %s392_s8 }
 0x316   : > { %s390_s7 = scalar_lea.hbm %s904_s2, %s503_s14  ;;  %s375_s9 = scalar_lea.sflag [#allocation8], %s835_s23 }
 0x317   : > { %s617_s10 = scalar_lea.vmem %s393_s8, 128  ;;  %s717_s0 = smov [#allocation9]  }
 0x318   : > { %p618_p11 = scmp.ne.s32.totalorder %s393_s8, %s617_s10  ;;  %s621_s19 = sshll.u32 %s717_s0, 4  ;;  %s622_s19 = int_to_ptr.vmem [resolvable:$false] %s621_s19 }
 0x319   : > { %s623_s22 = scalar_lea.vmem %s622_s19, 256  ;;  %p624_p4 = scmp.lt.s32.totalorder %s393_s8, %s622_s19 }
 0x31a   : > { %p619_p1 = pnand %p618_p11, %p799_p10  ;;  %p625_p5 = scmp.lt.s32.totalorder %s623_s22, %s617_s10 }
 0x31c   : > { %p620_p2 = pneg %p619_p1  ;;  %p626_p6 = por %p625_p5, %p624_p4 }
 0x31e   : > { %p627_p7 = pnand %p626_p6, %p620_p2 }
 0x320   : > { %630 = shalt.err (!%p627_p7)
}
 0x321   : > { %s631_s15 = scalar_lea.hbm %s390_s7, 128  ;;  %s635_s28 = scalar_lea.hbm %s904_s2, 256 }
 0x322   : > { %p632_p8 = scmp.ne.s32.totalorder %s390_s7, %s631_s15  ;;  %p636_p13 = scmp.lt.s32.totalorder %s390_s7, %s904_s2 }
 0x323   : > { %p637_p0 = scmp.lt.s32.totalorder %s635_s28, %s631_s15 }
 0x324   : > { %p633_p12 = pnand %p632_p8, %p799_p10 }
 0x325   : > { %p638_p9 = por %p637_p0, %p636_p13 }
 0x326   : > { %p634_p3 = pneg %p633_p12 }
 0x328   : > { %p639_p11 = pnand %p638_p9, %p634_p3 }
 0x32a   : > { %642 = shalt.err (!%p639_p11)
}
 0x32b   : > { %506 = dma.vmem_to_hbm [thread:$0]  (%p799_p10), %s393_s8, 128, %s390_s7, %s375_s9  }
 0x32c PF: > { %p517_p1 = scmp.ge.s32.totalorder %s713_s18, 2  ;;  %s404_s4 = sand.u32 1, %s685_s11  }
 0x32d   : > { %p910_p2 = scmp.ne.s32.totalorder %s908_s27, 0  ;;  %s405_s24 = scalar_lea.sflag [#allocation8], %s404_s4 }
 0x32f   : > { %p513_p4 = pnand %p517_p1, %p910_p2 }
 0x331   : > { %p514_p5 = pneg %p513_p4 }
 0x333   : > { %680 = dma.done.wait (%p514_p5), %s405_s24, 128  }
 0x334   : > { %682 = vsyncadd (%p514_p5), %s405_s24, 4294967168  ;;  %s19_s18 = sadd.s32 1, %s713_s18   ;;  %s911_s11 = smov %s689_s12 }
 0x335   : > { %p16_p6 = scmp.ge.s32.totalorder %s19_s18, 6   ;;  %s912_s12 = smov %s693_s13 }
 0x336   : > { %s913_s13 = smov %s812_s29  ;;  %s914_s14 = smov %s705_s16 }
 0x337   : > { %s915_s15 = smov %s709_s17  ;;  %s916_s16 = smov %s919_s20 }
 0x338   : > { %s917_s17 = smov %s923_s21  ;;  %18 = sbr.rel (!%p16_p6) target bundleno = 9 (0x9), region = 89 }
 0x33d   :  { %410 = vsyncpa [#allocation7], 1 }
 0x33e   :  { %412 = vsyncpa [#allocation7 + $0x1], 1 }
 0x33f   :  { %413 = vsyncpa [#allocation8], 1 }
 0x340   :  { %415 = vsyncpa [#allocation8 + $0x1], 1 }

</bundles_post_ra>
